<compile_context>
chip_gen: v7x
topology: tpu7x:2x2x1
jax: 0.10.0
libtpu: 0.0.40
codegen_flags: <defaults>
</compile_context>

<pallas_src>
import numpy as np
import jax
import jax.numpy as jnp
from jax import lax
from jax.experimental import pallas as pl
from jax.experimental.pallas import tpu as pltpu

EPS = 1e-6


def _round_up(x, m):
    return ((x + m - 1) // m) * m


def _vmem_limit_bytes():
    """Per-core VMEM limit with headroom (v7x: 64 MiB/TC, v5e/v6e: 128 MiB)."""
    cap = 64 * 1024 * 1024  # conservative fallback (v7x per-TC)
    try:
        info = pltpu.get_tpu_info()
        cap = int(getattr(info, "vmem_capacity_bytes", cap) or cap)
    except Exception:
        pass
    return max(32 * 1024 * 1024, min(int(cap * 0.75), 100 * 1024 * 1024))


def _choose_tiles(N, K, Dp, itemsize, budget):
    """Pick (TI, TN): TI*K ~ 512 MXU rows, TN lane-dense, shrink to VMEM budget."""
    # candidate (j) tile: minimize padding waste under a cap that scales with VMEM
    tn_cap = 2048 if budget >= 48 * 1024 * 1024 else 1024
    Nr = _round_up(N, 128)
    nj = -(-Nr // tn_cap)
    TN = _round_up(-(-Nr // nj), 128)
    # anchor (i) tile
    ti = max(1, 512 // max(K, 1))
    if ti >= N:
        TI = N                           # single anchor tile (full extent)
    else:
        TI = _round_up(ti, 8)

    def est(ti_, tn_):
        tik = ti_ * K
        return (2 * (tik + tn_) * Dp * itemsize       # double-buffered MXU operands
                + 2 * (tik * 128 + 128 * tn_) * 4     # hoisted squared norms
                + 2 * ti_ * tik * 4                   # block-diag ones
                + 3 * tik * tn_ * 4                   # live (TI*K, TN) f32 temps
                + 8 * ti_ * tn_ * 4)                  # (TI, TN) temps

    while TN > 128 and est(TI, TN) > budget:
        TN = max(128, TN // 2)
    while TI > 8 and TI % 8 == 0 and est(TI, TN) > budget:
        TI = max(8, (TI // 2) // 8 * 8)
    return TI, TN


def mc_soft_contrastive_loss(sto, str_emb, negative_scale, shift, *,
                             use_bf16_matmul=False):
    """Pallas implementation of MCSoftContrastiveLoss_det.forward(sto, str)."""
    sto = jnp.asarray(sto, jnp.float32)
    str_emb = jnp.asarray(str_emb, jnp.float32)
    N, K, D = sto.shape
    assert str_emb.shape == (N, D)

    # ---- tile sizing ------------------------------------------------------
    Dp = _round_up(D, 128)
    itemsize = 2 if use_bf16_matmul else 4
    vmem_limit = _vmem_limit_bytes()
    budget = int(vmem_limit * 0.6)
    TI, TN = _choose_tiles(N, K, Dp, itemsize, budget)
    Np_a = _round_up(N, TI)
    Np_c = _round_up(N, TN)
    grid = (Np_a // TI, Np_c // TN)
    TIK = TI * K

    # ---- conditional host-side padding (exact for the squared-distance form;
    #      padded rows/cols are masked out of the loss inside the kernel) ----
    if (Np_a, K, Dp) != sto.shape:
        sto = jnp.pad(sto, ((0, Np_a - N), (0, 0), (0, Dp - D)))
    if (Np_c, Dp) != str_emb.shape:
        str_emb = jnp.pad(str_emb, ((0, Np_c - N), (0, Dp - D)))
    sto_flat = sto.reshape(Np_a * K, Dp)          # pre-flattened: no in-kernel reshape

    mm_dtype = jnp.bfloat16 if use_bf16_matmul else jnp.float32
    sto_mm = sto_flat.astype(mm_dtype)
    str_mm = str_emb.astype(mm_dtype)

    # hoisted squared norms (consistent with what the MXU sees)
    sq_sto = jnp.sum(jnp.square(sto_mm.astype(jnp.float32)), axis=-1,
                     keepdims=True)                               # (Np_a*K, 1)
    sq_str = jnp.sum(jnp.square(str_mm.astype(jnp.float32)), axis=-1)[None, :]  # (1, Np_c)

    # constant block-diagonal ones: K-reduction as an MXU matmul (MXU has slack)
    blkdiag = jnp.repeat(jnp.eye(TI, dtype=jnp.float32), K, axis=1)  # (TI, TI*K)

    ns_sh = jnp.stack([jnp.asarray(negative_scale, jnp.float32).reshape(()),
                       jnp.asarray(shift, jnp.float32).reshape(())])  # (2,) SMEM

    log_k = float(np.log(K))

    def kernel(ns_sh_ref, a_ref, b_ref, sqa_ref, sqb_ref, blk_ref, out_ref):
        i = pl.program_id(0)
        j = pl.program_id(1)
        ns = ns_sh_ref[0]
        sh = ns_sh_ref[1]

        a = a_ref[...]                               # (TI*K, Dp)
        b = b_ref[...]                               # (TN, Dp)

        # ||a-b||^2 = ||a||^2 + ||b||^2 - 2 a.b   -> MXU
        ab = lax.dot_general(a, b, (((1,), (1,)), ((), ())),
                             preferred_element_type=jnp.float32)   # (TI*K, TN)
        d2 = sqa_ref[...] + sqb_ref[...] - 2.0 * ab
        d = jnp.sqrt(jnp.maximum(d2, 0.0) + EPS)
        s = (-ns) * d + sh                           # (TI*K, TN)

        # exp(s*m - logaddexp(s,-s)) == 0.5*(1 + m*tanh(s)); only sqrt+tanh on EUP
        th = jnp.tanh(s)                             # (TI*K, TN)

        # sum over the K Monte-Carlo samples via block-diagonal-ones matmul (MXU)
        T = lax.dot_general(blk_ref[...], th, (((1,), (0,)), ((), ())),
                            preferred_element_type=jnp.float32)    # (TI, TN)

        # matched mask applied AFTER the K-reduction
        a_ids = i * TI + lax.broadcasted_iota(jnp.int32, (TI, TN), 0)
        c_ids = j * TN + lax.broadcasted_iota(jnp.int32, (TI, TN), 1)
        m = jnp.where(a_ids == c_ids, 1.0, -1.0)
        arg = 0.5 * K + 0.5 * m * T
        # TODO(synk): in the fully-saturated regime (all m*s_k <= ~-9) the clamp caps
        # the NLL at log(K)+~85 instead of the reference's exact (huge) logsumexp.
        nll = log_k - jnp.log(jnp.maximum(arg, 1e-37))             # (TI, TN)

        # mask padded anchors / candidates, reduce candidates in-kernel
        valid = (a_ids < N) & (c_ids < N)
        nll = jnp.where(valid, nll, 0.0)
        partial = jnp.sum(nll, axis=-1, keepdims=True)             # (TI, 1)

        @pl.when(j == 0)
        def _():
            out_ref[...] = jnp.zeros_like(out_ref)
        out_ref[...] += partial

    out = pl.pallas_call(
        kernel,
        out_shape=jax.ShapeDtypeStruct((Np_a, 1), jnp.float32),
        grid=grid,
        in_specs=[
            pl.BlockSpec(memory_space=pltpu.MemorySpace.SMEM),       # (neg_scale, shift)
            pl.BlockSpec((TIK, Dp), lambda i, j: (i, 0)),            # sto (flattened) tile
            pl.BlockSpec((TN, Dp), lambda i, j: (j, 0)),             # str candidate tile
            pl.BlockSpec((TIK, 1), lambda i, j: (i, 0)),             # ||sto||^2 tile
            pl.BlockSpec((1, TN), lambda i, j: (0, j)),              # ||str||^2 tile
            pl.BlockSpec((TI, TIK), lambda i, j: (0, 0)),            # block-diag ones
        ],
        out_specs=pl.BlockSpec((TI, 1), lambda i, j: (i, 0)),        # per-anchor sum
        compiler_params=pltpu.CompilerParams(
            dimension_semantics=("parallel", "arbitrary"),
            vmem_limit_bytes=vmem_limit),
    )(ns_sh, sto_mm, str_mm, sq_sto, sq_str, blkdiag)

    return jnp.sum(out)


def _reference_loss(sto, str_emb, negative_scale, shift):
    """Pure-JAX reference mirroring the PyTorch module exactly."""
    N, K, D = sto.shape
    diff = sto[:, None, :, :] - str_emb[None, :, None, :]          # (N, N, K, D)
    d = jnp.sqrt(jnp.sum(diff * diff, axis=-1) + EPS)              # (N, N, K)
    s = -negative_scale * d + shift
    m = jnp.where(jnp.eye(N, dtype=bool), 1.0, -1.0)[:, :, None]   # (N, N, 1)
    t = s * m - jnp.logaddexp(s, -s)
    nll = -jax.scipy.special.logsumexp(t, axis=-1) + jnp.log(jnp.float32(K))
    return jnp.sum(nll)


if __name__ == "__main__":
    # Deterministic "parameters" (args.shift, args.negative_scale from __init__).
    # Moderate values keep matched-pair logits out of the tanh-saturation regime
    # (|m*s| < ~9), where the fast tanh-identity path clamps instead of
    # reproducing the reference's huge-but-finite logsumexp value.
    shift = 1.0
    negative_scale = 0.5
    # args.uniform / args.vib are stored but unused by forward()
    # TODO(synk): self.distance / self.right_pos / self.right_neg side attributes are
    # not returned by forward and are therefore not materialized here.

    N, K, D = 4, 8, 32
    key = jax.random.PRNGKey(0)
    k1, k2 = jax.random.split(key)
    sto = jax.random.normal(k1, (N, K, D), dtype=jnp.float32)       # input `sto` (N,K,D)
    str_emb = jax.random.normal(k2, (N, D), dtype=jnp.float32)      # input `str` (N,D)

    loss = mc_soft_contrastive_loss(sto, str_emb, negative_scale, shift)
    loss = jax.block_until_ready(loss)

    ref = _reference_loss(sto, str_emb, jnp.float32(negative_scale),
                          jnp.float32(shift))
    ref = jax.block_until_ready(ref)

    np.testing.assert_allclose(np.asarray(loss), np.asarray(ref),
                               rtol=2e-4, atol=1e-3)
    print("KERNEL_OK")
</pallas_src>

<mosaic_0001>
module attributes {stable_mosaic.version = 11 : i64} {
  func.func @kernel(%arg0: i32, %arg1: i32, %arg2: memref<2xf32, #tpu.memory_space<smem>>, %arg3: memref<32x128xf32, #tpu.memory_space<vmem>>, %arg4: memref<128x128xf32, #tpu.memory_space<vmem>>, %arg5: memref<32x1xf32, #tpu.memory_space<vmem>>, %arg6: memref<1x128xf32, #tpu.memory_space<vmem>>, %arg7: memref<4x32xf32, #tpu.memory_space<vmem>>, %arg8: memref<4x1xf32, #tpu.memory_space<vmem>>) attributes {dimension_semantics = [#tpu.dimension_semantics<parallel>, #tpu.dimension_semantics<arbitrary>], iteration_bounds = array<i64: 1, 1>, scalar_prefetch = 0 : i64, scratch_operands = 0 : i64, tpu.core_type = #tpu.core_type<tc>, window_params = [{transform_indices = @transform_0, window_bounds = array<i64: 2>}, {transform_indices = @transform_1, window_bounds = array<i64: 32, 128>}, {transform_indices = @transform_2, window_bounds = array<i64: 128, 128>}, {transform_indices = @transform_3, window_bounds = array<i64: 32, 1>}, {transform_indices = @transform_4, window_bounds = array<i64: 1, 128>}, {pipeline_mode = #tpu.pipeline_mode<synchronous>, transform_indices = @transform_5, window_bounds = array<i64: 4, 32>}, {transform_indices = @transform_6, window_bounds = array<i64: 4, 1>}]} {
    %c0 = arith.constant 0 : index
    %0 = memref.load %arg2[%c0] : memref<2xf32, #tpu.memory_space<smem>>
    %c1 = arith.constant 1 : index
    %1 = memref.load %arg2[%c1] : memref<2xf32, #tpu.memory_space<smem>>
    %c0_0 = arith.constant 0 : index
    %c0_1 = arith.constant 0 : index
    %2 = vector.load %arg3[%c0_0, %c0_1] : memref<32x128xf32, #tpu.memory_space<vmem>>, vector<32x128xf32>
    %c0_2 = arith.constant 0 : index
    %c0_3 = arith.constant 0 : index
    %3 = vector.load %arg4[%c0_2, %c0_3] : memref<128x128xf32, #tpu.memory_space<vmem>>, vector<128x128xf32>
    %cst = arith.constant dense<0.000000e+00> : vector<32x128xf32>
    %4 = tpu.matmul %2, %3, %cst {dimension_numbers = #tpu.dot_dimension_numbers<[1], [1], [0], [0], [0, 0, 1, 0], [], []>} : vector<32x128xf32>, vector<128x128xf32>, vector<32x128xf32> -> vector<32x128xf32>
    %c0_4 = arith.constant 0 : index
    %c0_5 = arith.constant 0 : index
    %5 = vector.load %arg5[%c0_4, %c0_5] : memref<32x1xf32, #tpu.memory_space<vmem>>, vector<32x1xf32>
    %c0_6 = arith.constant 0 : index
    %c0_7 = arith.constant 0 : index
    %6 = vector.load %arg6[%c0_6, %c0_7] : memref<1x128xf32, #tpu.memory_space<vmem>>, vector<1x128xf32>
    %7 = vector.broadcast %5 : vector<32x1xf32> to vector<32x128xf32>
    %8 = vector.broadcast %6 : vector<1x128xf32> to vector<32x128xf32>
    %9 = arith.addf %7, %8 : vector<32x128xf32>
    %cst_8 = arith.constant 2.000000e+00 : f32
    %10 = vector.broadcast %cst_8 : f32 to vector<32x128xf32>
    %11 = arith.mulf %10, %4 : vector<32x128xf32>
    %12 = arith.subf %9, %11 : vector<32x128xf32>
    %cst_9 = arith.constant 0.000000e+00 : f32
    %13 = vector.broadcast %cst_9 : f32 to vector<32x128xf32>
    %14 = arith.maximumf %12, %13 : vector<32x128xf32>
    %cst_10 = arith.constant 9.99999997E-7 : f32
    %15 = vector.broadcast %cst_10 : f32 to vector<32x128xf32>
    %16 = arith.addf %14, %15 : vector<32x128xf32>
    %17 = math.sqrt %16 : vector<32x128xf32>
    %cst_11 = arith.constant 0.000000e+00 : f32
    %18 = arith.subf %cst_11, %0 : f32
    %19 = vector.broadcast %18 : f32 to vector<32x128xf32>
    %20 = arith.mulf %19, %17 : vector<32x128xf32>
    %21 = vector.broadcast %1 : f32 to vector<32x128xf32>
    %22 = arith.addf %20, %21 : vector<32x128xf32>
    %23 = math.tanh %22 : vector<32x128xf32>
    %c0_12 = arith.constant 0 : index
    %c0_13 = arith.constant 0 : index
    %24 = vector.load %arg7[%c0_12, %c0_13] : memref<4x32xf32, #tpu.memory_space<vmem>>, vector<4x32xf32>
    %cst_14 = arith.constant dense<0.000000e+00> : vector<4x128xf32>
    %25 = tpu.matmul %24, %23, %cst_14 {dimension_numbers = #tpu.dot_dimension_numbers<[1], [0], [0], [1], [0, 0, 1, 1], [], []>} : vector<4x32xf32>, vector<32x128xf32>, vector<4x128xf32> -> vector<4x128xf32>
    %c4_i32 = arith.constant 4 : i32
    %26 = arith.muli %arg0, %c4_i32 : i32
    %27 = tpu.iota {dimensions = array<i32: 0>} : vector<4x128xi32>
    %28 = vector.broadcast %26 : i32 to vector<4x128xi32>
    %29 = arith.addi %28, %27 : vector<4x128xi32>
    %c128_i32 = arith.constant 128 : i32
    %30 = arith.muli %arg1, %c128_i32 : i32
    %31 = tpu.iota {dimensions = array<i32: 1>} : vector<4x128xi32>
    %32 = vector.broadcast %30 : i32 to vector<4x128xi32>
    %33 = arith.addi %32, %31 : vector<4x128xi32>
    %34 = arith.cmpi eq, %29, %33 : vector<4x128xi32>
    %cst_15 = arith.constant 1.000000e+00 : f32
    %cst_16 = arith.constant -1.000000e+00 : f32
    %35 = vector.broadcast %cst_15 : f32 to vector<4x128xf32>
    %36 = vector.broadcast %cst_16 : f32 to vector<4x128xf32>
    %37 = arith.select %34, %35, %36 : vector<4x128xi1>, vector<4x128xf32>
    %cst_17 = arith.constant 5.000000e-01 : f32
    %38 = vector.broadcast %cst_17 : f32 to vector<4x128xf32>
    %39 = arith.mulf %38, %37 : vector<4x128xf32>
    %40 = arith.mulf %39, %25 : vector<4x128xf32>
    %cst_18 = arith.constant 4.000000e+00 : f32
    %41 = vector.broadcast %cst_18 : f32 to vector<4x128xf32>
    %42 = arith.addf %41, %40 : vector<4x128xf32>
    %cst_19 = arith.constant 9.99999991E-38 : f32
    %43 = vector.broadcast %cst_19 : f32 to vector<4x128xf32>
    %44 = arith.maximumf %42, %43 : vector<4x128xf32>
    %45 = math.log %44 : vector<4x128xf32>
    %cst_20 = arith.constant 2.07944155 : f32
    %46 = vector.broadcast %cst_20 : f32 to vector<4x128xf32>
    %47 = arith.subf %46, %45 : vector<4x128xf32>
    %c4_i32_21 = arith.constant 4 : i32
    %48 = vector.broadcast %c4_i32_21 : i32 to vector<4x128xi32>
    %49 = arith.cmpi slt, %29, %48 : vector<4x128xi32>
    %c4_i32_22 = arith.constant 4 : i32
    %50 = vector.broadcast %c4_i32_22 : i32 to vector<4x128xi32>
    %51 = arith.cmpi slt, %33, %50 : vector<4x128xi32>
    %52 = arith.andi %49, %51 : vector<4x128xi1>
    %cst_23 = arith.constant 0.000000e+00 : f32
    %53 = vector.broadcast %cst_23 : f32 to vector<4x128xf32>
    %54 = arith.select %52, %47, %53 : vector<4x128xi1>, vector<4x128xf32>
    %cst_24 = arith.constant dense<0.000000e+00> : vector<4xf32>
    %55 = vector.multi_reduction <add>, %54, %cst_24 [1] : vector<4x128xf32> to vector<4xf32>
    %56 = vector.shape_cast %55 : vector<4xf32> to vector<4x1xf32>
    %c0_i32 = arith.constant 0 : i32
    %57 = arith.cmpi eq, %arg1, %c0_i32 : i32
    %58 = arith.extui %57 : i1 to i32
    %c0_i32_25 = arith.constant 0 : i32
    %59 = arith.cmpi ne, %58, %c0_i32_25 : i32
    scf.if %59 {
      %cst_30 = arith.constant 0.000000e+00 : f32
      %63 = vector.broadcast %cst_30 : f32 to vector<4x1xf32>
      %c0_31 = arith.constant 0 : index
      %c0_32 = arith.constant 0 : index
      %64 = vector.load %arg8[%c0_31, %c0_32] : memref<4x1xf32, #tpu.memory_space<vmem>>, vector<4x1xf32>
      tpu.vector_store %arg8[%c0_31, %c0_32], %63 {strides = array<i32>} : memref<4x1xf32, #tpu.memory_space<vmem>>, vector<4x1xf32>,
    } else {
    }
    %c0_26 = arith.constant 0 : index
    %c0_27 = arith.constant 0 : index
    %60 = vector.load %arg8[%c0_26, %c0_27] : memref<4x1xf32, #tpu.memory_space<vmem>>, vector<4x1xf32>
    %61 = arith.addf %60, %56 : vector<4x1xf32>
    %c0_28 = arith.constant 0 : index
    %c0_29 = arith.constant 0 : index
    %62 = vector.load %arg8[%c0_28, %c0_29] : memref<4x1xf32, #tpu.memory_space<vmem>>, vector<4x1xf32>
    tpu.vector_store %arg8[%c0_28, %c0_29], %61 {strides = array<i32>} : memref<4x1xf32, #tpu.memory_space<vmem>>, vector<4x1xf32>,
    return
  }
  func.func @transform_0(%arg0: i32, %arg1: i32) -> i32 {
    %c0_i32 = arith.constant 0 : i32
    %c0_i32_0 = arith.constant 0 : i32
    return %c0_i32 : i32
  }
  func.func @transform_1(%arg0: i32, %arg1: i32) -> (i32, i32) {
    %c0_i32 = arith.constant 0 : i32
    %c0_i32_0 = arith.constant 0 : i32
    return %arg0, %c0_i32 : i32, i32
  }
  func.func @transform_2(%arg0: i32, %arg1: i32) -> (i32, i32) {
    %c0_i32 = arith.constant 0 : i32
    %c0_i32_0 = arith.constant 0 : i32
    return %arg1, %c0_i32 : i32, i32
  }
  func.func @transform_3(%arg0: i32, %arg1: i32) -> (i32, i32) {
    %c0_i32 = arith.constant 0 : i32
    %c0_i32_0 = arith.constant 0 : i32
    return %arg0, %c0_i32 : i32, i32
  }
  func.func @transform_4(%arg0: i32, %arg1: i32) -> (i32, i32) {
    %c0_i32 = arith.constant 0 : i32
    %c0_i32_0 = arith.constant 0 : i32
    return %c0_i32, %arg1 : i32, i32
  }
  func.func @transform_5(%arg0: i32, %arg1: i32) -> (i32, i32) {
    %c0_i32 = arith.constant 0 : i32
    %c0_i32_0 = arith.constant 0 : i32
    %c0_i32_1 = arith.constant 0 : i32
    return %c0_i32, %c0_i32_0 : i32, i32
  }
  func.func @transform_6(%arg0: i32, %arg1: i32) -> (i32, i32) {
    %c0_i32 = arith.constant 0 : i32
    %c0_i32_0 = arith.constant 0 : i32
    return %arg0, %c0_i32 : i32, i32
  }
}

</mosaic_0001>

<bundles_post_ra>
// kernel: tpu_custom_call.1
= control target key start
LH: loop header
LB: loop body
LE: loop exit
PB: predicated region body
PF: predicated region fallthrough
CT: control target
= control target key end

     0   :  { %11 = vsyncpa [#allocation4], 0  ;;  %s658_s0 = inlined_call_operand.hbm [shape: f32[2], index: 0, kind: input, shape index: {}]   ;;  %s659_s1 = inlined_call_operand.vmem [shape: f32[32,128], index: 1, kind: input, shape index: {}]   ;;  %s660_s2 = inlined_call_operand.hbm [shape: f32[128,128], index: 2, kind: input, shape index: {}]   ;;  %s661_s3 = inlined_call_operand.vmem [shape: f32[32,1], index: 3, kind: input, shape index: {}]   ;;  %s662_s4 = inlined_call_operand.vmem [shape: f32[1,128], index: 4, kind: input, shape index: {}]   ;;  %s663_s5 = inlined_call_operand.vmem [shape: f32[4,32], index: 5, kind: input, shape index: {}]   ;;  %s664_s6 = inlined_call_operand.vmem [shape: f32[4,1], index: 6, kind: output, shape index: {}]  }
   0x1   :  { %12 = vsyncpa [#allocation3], 0  ;;  %s511_s23 = scalar_lea.hbm %s658_s0, 16 }
   0x2   :  { %p512_p0 = scmp.ne.s32.totalorder %s658_s0, %s511_s23  ;;  %p515_p1 = scmp.lt.u32.totalorder %s511_s23, %s658_s0 }
   0x4   :  { %p517_p2 = pnand %p515_p1, %p512_p0 }
   0x6   :  { %520 = shalt.err (!%p517_p2)
}
   0x7   :  { %s547_s28 = smov [#allocation2]   ;;  %s548_s7 = smov [#allocation5]  }
   0x8   :  { %20 = dma.hbm_to_smem %s658_s0, 16, %s547_s28, [#allocation4]  }
   0x9   :  { %s28_s8 = sshll.u32 %s548_s7, 4  ;;  %s521_s11 = scalar_lea.hbm %s660_s2, 2048  ;;  %s29_s8 = int_to_ptr.vmem [resolvable:$true] %s28_s8 }
   0xa   :  { %p522_p3 = scmp.ne.s32.totalorder %s660_s2, %s521_s11  ;;  %p525_p4 = scmp.lt.u32.totalorder %s521_s11, %s660_s2 }
   0xc   :  { %p527_p5 = pnand %p525_p4, %p522_p3 }
   0xe   :  { %530 = shalt.err (!%p527_p5)
}
   0xf   :  { %s531_s16 = scalar_lea.vmem %s29_s8, 2048  ;;  %p536_p7 = scmp.lt.s32.totalorder %s29_s8, %s29_s8 }
  0x10   :  { %p532_p6 = scmp.ne.s32.totalorder %s29_s8, %s531_s16  ;;  %p537_p8 = scmp.lt.s32.totalorder %s531_s16, %s531_s16 }
  0x12   :  { %p538_p9 = por %p537_p8, %p536_p7 }
  0x14   :  { %p539_p10 = pnand %p538_p9, %p532_p6 }
  0x16   :  { %542 = shalt.err (!%p539_p10)
}
  0x17   :  { %s549_s0 = smov 128   ;;  %s550_s17 = smov 8  }
  0x18   :  { %34 = dma.hbm_to_vmem [thread:$0]  %s660_s2, 2048, %s29_s8, [#allocation3], %s549_s0, %s549_s0, %s550_s17  }
  0x19   :  { %543 = dma.done.wait [#allocation4], 16  }
  0x1a   :  { %544 = vsyncadd [#allocation4], 4294967280 }
  0x1b   :  { %545 = dma.done.wait [#allocation3], 2048  }
  0x1c   :  { %546 = vsyncadd [#allocation3], 4294965248 }
  0x1d   :  { %47 = sfence }
  0x1e   :  { %v54_v0 = vld [vmem:[#allocation5] sm:$0xff]  ;;  %v55_v1 = vld [vmem:[#allocation5 + $0x8] sm:$0xff]  ;;  %v56_v2 = vld [vmem:[#allocation5 + $0x10] sm:$0xff]  ;;  %v551_v5 = vmov 0   ;;  %v552_v33 = vmov 0.0|0.0   ;;  %vm355_vm0 = vcmask 3072  }
  0x1f   :  { %v444_v3 = vpack.c.bf16 %v55_v1, %v54_v0  ;;  %v57_v4 = vld [vmem:[#allocation5 + $0x18] sm:$0xff]  ;;  %491 = vset.pattern.permute.xlu0 %v551_v5  ;;  %492 = vset.pattern.permute.xlu1 %v551_v5  ;;  %v50_v7 = vld [vmem:[%s659_s1] sm:$0xff]  ;;  %v59_v9 = vld [vmem:[#allocation5 + $0x28] sm:$0xff]  ;;  %vm553_vm1 = vmmov 0   ;;  %v554_v34 = vmov 0.0   ;;  %vm250_vm10 = vcmask 261120  }
  0x20   :  { %v448_v6 = vpack.c.bf16 %v57_v4, %v56_v2  ;;  %v58_v8 = vld [vmem:[#allocation5 + $0x20] sm:$0xff]  ;;  %427 = vmatprep.mubr.f32.mxu0 %v50_v7  ;;  %v157_v11 = vld [vmem:[%s661_s3 + $0x10] sm:$0xff]  ;;  %v156_v12 = vld [vmem:[%s661_s3 + $0x8] sm:$0xff]  ;;  %476 = vmatprep.subr.bf16.mxu1 %v552_v33  ;;  %356 = vst.msk [vmem:[%s664_s6] sm:$0xf] %vm355_vm0, %v554_v34  ;;  %vm347_vm15 = vcmask 1043456  }
  0x21   :  { %445 = vmatprep.subr.bf16.mxu0 %v444_v3  ;;  %v155_v10 = vld [vmem:[%s661_s3] sm:$0xff]  ;;  %172 = vperm.xlu1 %492, %v157_v11   ;;  %v452_v13 = vpack.c.bf16 %v59_v9, %v58_v8  ;;  %v158_v14 = vld [vmem:[%s661_s3 + $0x18] sm:$0xff]  ;;  %v60_v15 = vld [vmem:[#allocation5 + $0x30] sm:$0xff] }
  0x22   :  { %447 = vmatpush3.bf16.xpose.msra.mxu0 %v444_v3  ;;  %162 = vperm.xlu0 %491, %v155_v10   ;;  %v61_v16 = vld [vmem:[#allocation5 + $0x38] sm:$0xff]  ;;  %v62_v18 = vld [vmem:[#allocation5 + $0x40] sm:$0xff]  ;;  %v63_v19 = vld [vmem:[#allocation5 + $0x48] sm:$0xff] }
  0x23   :  { %449 = vmatprep.subr.bf16.mxu0 %v448_v6  ;;  %v456_v17 = vpack.c.bf16 %v61_v16, %v60_v15  ;;  %v460_v20 = vpack.c.bf16 %v63_v19, %v62_v18  ;;  %v64_v21 = vld [vmem:[#allocation5 + $0x50] sm:$0xff]  ;;  %v65_v22 = vld [vmem:[#allocation5 + $0x58] sm:$0xff]  ;;  %v66_v24 = vld [vmem:[#allocation5 + $0x60] sm:$0xff]  ;;  %441 = vmatprep.mubr.msk.f32.mxu1 %vm553_vm1, %v554_v34 }
  0x24   :  { %v464_v23 = vpack.c.bf16 %v65_v22, %v64_v21  ;;  %v67_v25 = vld [vmem:[#allocation5 + $0x68] sm:$0xff]  ;;  %v68_v27 = vld [vmem:[#allocation5 + $0x70] sm:$0xff]  ;;  %v69_v28 = vld [vmem:[#allocation5 + $0x78] sm:$0xff] }
  0x25   :  { %177 = vperm.xlu1 %492, %v158_v14   ;;  %v468_v26 = vpack.c.bf16 %v67_v25, %v66_v24  ;;  %v472_v29 = vpack.c.bf16 %v69_v28, %v68_v27  ;;  %v51_v30 = vld [vmem:[%s659_s1 + $0x8] sm:$0xff]  ;;  %v52_v31 = vld [vmem:[%s659_s1 + $0x10] sm:$0xff]  ;;  %v53_v32 = vld [vmem:[%s659_s1 + $0x18] sm:$0xff]  ;;  %s48_s1 = sld [smem:[#allocation2]] }
  0x26   :  { %167 = vperm.xlu0 %491, %v156_v12   ;;  %v368_v37 = vld [vmem:[%s662_s4] ss:$0 sm:$0xff]  ;;  %s367_s4 = sld [smem:[#allocation2 + $0x1]] }
  0x2a   :  { %451 = vmatpush3.bf16.xpose.msra.mxu0 %v448_v6 }
  0x2b   :  { %453 = vmatprep.subr.bf16.mxu0 %v452_v13  ;;  %s234_s14 = ssub.f32 0.0, %s48_s1 }
  0x2c   :  { %v240_v11 = vstv %s367_s4 }
  0x2d   :  { %v235_v5 = vstv %s234_s14 }
  0x32   :  { %455 = vmatpush3.bf16.xpose.msra.mxu0 %v452_v13 }
  0x33   :  { %457 = vmatprep.subr.bf16.mxu0 %v456_v17 }
  0x3a   :  { %459 = vmatpush3.bf16.xpose.msra.mxu0 %v456_v17 }
  0x3b   :  { %461 = vmatprep.subr.bf16.mxu0 %v460_v20 }
  0x42   :  { %463 = vmatpush3.bf16.xpose.msra.mxu0 %v460_v20 }
  0x43   :  { %465 = vmatprep.subr.bf16.mxu0 %v464_v23 }
  0x4a   :  { %467 = vmatpush3.bf16.xpose.msra.mxu0 %v464_v23 }
  0x4b   :  { %469 = vmatprep.subr.bf16.mxu0 %v468_v26 }
  0x52   :  { %471 = vmatpush3.bf16.xpose.msra.mxu0 %v468_v26 }
  0x53   :  { %473 = vmatprep.subr.bf16.mxu0 %v472_v29 }
  0x5a   :  { %475 = vmatpush3.bf16.xpose.msra.mxu0 %v472_v29 }
  0x61   :  { %428 = vmatmul.mubr.f32.vlgmr.msra.gmra.mrb[0].mxu0 %v51_v30 }
  0x62   :  { %430 = vmatprep.mubr.f32.mxu0 %v52_v31 }
  0x65   :  { %431 = vmatmul.mubr.f32.gmra.mrb[2].mxu0 %v53_v32 }
  0xa0   :  { %v173_v36 = vpop.permute.xlu1 %172 }
  0xa1   :  { %v163_v35 = vpop.permute.xlu0 %162  ;;  %v188_v53 = vadd.f32 %v368_v37, %v173_v36 }
  0xa2   :  { %v186_v43 = vadd.f32 %v368_v37, %v163_v35 }
  0xa4   :  { %v178_v44 = vpop.permute.xlu1 %177 }
  0xa5   :  { %v168_v38 = vpop.permute.xlu0 %167  ;;  %v189_v50 = vadd.f32 %v368_v37, %v178_v44 }
  0xa6   :  { %v187_v40 = vadd.f32 %v368_v37, %v168_v38  ;;  %v249_v37 = vld [vmem:[%s663_s5] sm:$0xf]  ;;  %v325_v38 = vlaneseq }
 0x134   :  { %v429_v39 = vpop.f32.mrb[0].mxu0 }
 0x135   :  { %v191_v41 = vmul.f32 2.0, %v429_v39  ;;  %v136_v42 = vpop.f32.mrb[1].mxu0  ;;  %v326_v39 = vshrl.u32 %v325_v38, 7 }
 0x136   :  { %v190_v45 = vmul.f32 2.0, %v136_v42 }
 0x137   :  { %v195_v46 = vsub.f32 %v187_v40, %v191_v41  ;;  %v331_v40 = vand.u32 127, %v325_v38  ;;  %v555_v41 = vmov -1.0   ;;  %vm343_vm12 = vcmp.lt.s32.totalorder %v326_v39, 4 }
 0x138   :  { %v194_v47 = vsub.f32 %v186_v43, %v190_v45  ;;  %v432_v48 = vpop.f32.mrb[2].mxu0 }
 0x139   :  { %v199_v49 = vmax.f32 %v195_v46, 0.0  ;;  %v193_v51 = vmul.f32 2.0, %v432_v48  ;;  %v146_v52 = vpop.f32.mrb[3].mxu0  ;;  %vm334_vm11 = vcmp.eq.s32.totalorder %v326_v39, %v331_v40  ;;  %vm344_vm13 = vcmp.lt.s32.totalorder %v331_v40, 4 }
 0x13a   :  { %v198_v54 = vmax.f32 %v194_v47, 0.0  ;;  %v192_v55 = vmul.f32 2.0, %v146_v52  ;;  %v335_v42 = vsel %vm334_vm11, 1.0, %v555_v41  ;;  %vm345_vm14 = vmand %vm343_vm12, %vm344_vm13 }
 0x13b   :  { %v203_v56 = vadd.f32 1e-06, %v199_v49  ;;  %v197_v57 = vsub.f32 %v189_v50, %v193_v51  ;;  %v336_v43 = vmul.f32 0.5, %v335_v42 }
 0x13c   :  { %v202_v58 = vadd.f32 1e-06, %v198_v54  ;;  %v196_v59 = vsub.f32 %v188_v53, %v192_v55  ;;  %v357_v53 = vld [vmem:[%s664_s6] sm:$0xf] }
 0x13d   :  { %493 = vrsqrt.f32 %v203_v56  ;;  %v201_v60 = vmax.f32 %v197_v57, 0.0  ;;  %vm215_vm2 = vcmp.eq.f32.partialorder %v203_v56, inf  ;;  %v218_v4 = vand.u32 2147483648, %v203_v56 }
 0x13e   :  { %495 = vrsqrt.f32 %v202_v58  ;;  %v200_v61 = vmax.f32 %v196_v59, 0.0  ;;  %vm208_vm3 = vcmp.eq.f32.partialorder %v202_v58, inf  ;;  %v211_v6 = vand.u32 2147483648, %v202_v58 }
 0x13f   :  { %v205_v62 = vadd.f32 1e-06, %v201_v60  ;;  %vm217_vm4 = vcmp.eq.f32.partialorder %v203_v56, 0.0  ;;  %vm210_vm5 = vcmp.eq.f32.partialorder %v202_v58, 0.0 }
 0x140   :  { %v204_v63 = vadd.f32 1e-06, %v200_v61 }
 0x141   :  { %497 = vrsqrt.f32 %v205_v62  ;;  %vm229_vm6 = vcmp.eq.f32.partialorder %v205_v62, inf  ;;  %v232_v16 = vand.u32 2147483648, %v205_v62  ;;  %vm231_vm7 = vcmp.eq.f32.partialorder %v205_v62, 0.0 }
 0x142   :  { %499 = vrsqrt.f32 %v204_v63  ;;  %vm222_vm8 = vcmp.eq.f32.partialorder %v204_v63, inf  ;;  %v225_v19 = vand.u32 2147483648, %v204_v63  ;;  %vm224_vm9 = vcmp.eq.f32.partialorder %v204_v63, 0.0 }
 0x147   :  { %v494_v0 = vpop.eup %493 }
 0x148   :  { %v496_v1 = vpop.eup %495  ;;  %v214_v2 = vmul.f32 %v494_v0, %v203_v56 }
 0x149   :  { %v207_v3 = vmul.f32 %v496_v1, %v202_v58 }
 0x14a   :  { %v216_v7 = vsel %vm215_vm2, %v203_v56, %v214_v2 }
 0x14b   :  { %v498_v8 = vpop.eup %497  ;;  %v209_v9 = vsel %vm208_vm3, %v202_v58, %v207_v3  ;;  %v219_v10 = vsel %vm217_vm4, %v218_v4, %v216_v7 }
 0x14c   :  { %v500_v12 = vpop.eup %499  ;;  %v228_v13 = vmul.f32 %v498_v8, %v205_v62  ;;  %v212_v14 = vsel %vm210_vm5, %v211_v6, %v209_v9  ;;  %v237_v15 = vmul.f32 %v235_v5, %v219_v10 }
 0x14d   :  { %v221_v17 = vmul.f32 %v500_v12, %v204_v63  ;;  %v236_v18 = vmul.f32 %v235_v5, %v212_v14 }
 0x14e   :  { %v242_v20 = vadd.f32 %v240_v11, %v237_v15  ;;  %v230_v21 = vsel %vm229_vm6, %v205_v62, %v228_v13 }
 0x14f   :  { %v241_v22 = vadd.f32 %v240_v11, %v236_v18  ;;  %v223_v23 = vsel %vm222_vm8, %v204_v63, %v221_v17  ;;  %v233_v24 = vsel %vm231_vm7, %v232_v16, %v230_v21 }
 0x150   :  { %501 = vtanh.f32 %v242_v20  ;;  %v226_v25 = vsel %vm224_vm9, %v225_v19, %v223_v23  ;;  %v239_v26 = vmul.f32 %v235_v5, %v233_v24 }
 0x151   :  { %503 = vtanh.f32 %v241_v22  ;;  %v238_v27 = vmul.f32 %v235_v5, %v226_v25 }
 0x152   :  { %v244_v28 = vadd.f32 %v240_v11, %v239_v26 }
 0x153   :  { %v243_v29 = vadd.f32 %v240_v11, %v238_v27 }
 0x154   :  { %505 = vtanh.f32 %v244_v28 }
 0x155   :  { %507 = vtanh.f32 %v243_v29 }
 0x15a   :  { %v502_v30 = vpop.eup %501 }
 0x15b   :  { %v504_v31 = vpop.eup %503 }
 0x15c   :  { %v477_v32 = vpack.c.bf16 %v502_v30, %v504_v31 }
 0x15e   :  { %v506_v34 = vpop.eup %505  ;;  %478 = vmatpush3.bf16.msra.mxu1 %v477_v32 }
 0x15f   :  { %v508_v35 = vpop.eup %507  ;;  %479 = vmatprep.subr.bf16.mxu1 %v552_v33 }
 0x160   :  { %v480_v36 = vpack.c.bf16 %v506_v34, %v508_v35 }
 0x162   :  { %481 = vmatpush3.bf16.msra.mxu1 %v480_v36 }
 0x165   :  { %442 = vmatmul.mubr.msk.f32.vlgmr.msra.gmra.mrb[0].mxu1 %vm250_vm10, %v249_v37 }
 0x238   :  { %v320_v44 = vpop.f32.mrb[0].mxu1 }
 0x239   :  { %v337_v45 = vmul.f32 %v336_v43, %v320_v44  ;;  %v443_v46 = vpop.f32.mrb[1].mxu1 }
 0x23b   :  { %v338_v47 = vadd.f32 4.0, %v337_v45 }
 0x23d   :  { %v339_v33 = vmax.f32 %v338_v47, 1e-37 }
 0x23f   :  { %509 = vlog2.f32 %v339_v33 }
 0x249   :  { %v510_v48 = vpop.eup %509 }
 0x24a   :  { %v341_v49 = vmul.f32 0.6931472, %v510_v48 }
 0x24c   :  { %v342_v50 = vsub.f32 2.0794415, %v341_v49 }
 0x24e   :  { %v346_v51 = vsel %vm345_vm14, %v342_v50, 0.0 }
 0x24f   :  { %v348_v52 = vsel %vm347_vm15, %v346_v51, 0.0 }
 0x250   :  { %349 = vadd.xlane.f32.xlu0 %v348_v52 }
 0x2dd   :  { %v350_v54 = vpop.xlane.xlu0 %349 }
 0x2de   :  { %v358_v55 = vadd.f32 %v357_v53, %v350_v54 }
 0x2e0   :  { %360 = vst.msk [vmem:[%s664_s6] sm:$0xf] %vm355_vm0, %v358_v55 }
 0x2e1   :  { %365 = vsyncpa [#allocation3], 1 }
 0x2e2   :  { %366 = vsyncpa [#allocation4], 1 }

</bundles_post_ra>
